<compile_context>
chip_gen: v7x
topology: tpu7x:2x2x1
jax: 0.10.0
libtpu: 0.0.40
codegen_flags: <defaults>
</compile_context>

<pallas_src>
import functools

import jax
import jax.numpy as jnp
from jax.experimental import pallas as pl
from jax.experimental.pallas import tpu as pltpu


# --------------------------------------------------------------------------
# Generation-aware VMEM budgeting
# --------------------------------------------------------------------------
def _tpu_vmem_capacity_bytes():
    try:
        info = pltpu.get_tpu_info()
        for attr in ("vmem_capacity_bytes", "vmem_size_bytes", "vmem_bytes"):
            v = getattr(info, attr, None)
            if v:
                return int(v)
    except Exception:
        pass
    return 64 << 20  # conservative fallback (v7x per-TC VMEM)


def _vmem_budgets():
    cap = _tpu_vmem_capacity_bytes()
    if cap >= (96 << 20):           # v5e / v6e: 128 MiB physical VMEM
        return 96 << 20, 20 << 20   # (scoped vmem limit, per-step tile budget)
    return 40 << 20, 10 << 20       # v7x: 64 MiB per TensorCore


def _choose_tb(b, c, itemsize, tile_budget):
    """Batch-tile rows: as big as the VMEM tile budget allows, aligned to the
    dtype's native sublane packing, with >= 2 grid steps when the batch is big
    enough so the 'parallel' axis can shard across v7x's two TensorCores."""
    itemsize = max(int(itemsize), 1)
    sublane = max(8, 32 // itemsize)        # 8 f32 / 16 bf16 / 32 int8-fp8
    # bytes per batch row per grid step:
    #   y in + logits out, each double-buffered          -> 4*itemsize*c
    #   f32 intermediates (cast + exp) held in VMEM/vregs -> ~8*c
    #   labels (int32, double-buffered)                   -> ~16
    per_row = c * (4 * itemsize + 8) + 16
    tb = int(tile_budget) // max(per_row, 1)
    tb = max(sublane, (tb // sublane) * sublane)
    if tb >= b:
        if b > 2 * sublane:
            # split the batch into (at least) two sublane-aligned blocks
            half = (b + 1) // 2
            tb = ((half + sublane - 1) // sublane) * sublane
        else:
            tb = b  # single block equal to the full batch (no partial rows)
    return tb


# --------------------------------------------------------------------------
# Kernels
# --------------------------------------------------------------------------
def _softmax_xent_kernel(b, tb, y_ref, labels_ref, logits_ref, nll_ref):
    # y_ref: (tb, C) ; labels_ref: (tb, 1) int32 ; logits_ref: (tb, C)
    # nll_ref: (8, 128) f32 -- per-tile partial NLL sum broadcast over the block
    y = y_ref[...].astype(jnp.float32)
    m = jnp.max(y, axis=1, keepdims=True)             # (tb, 1) row max
    e = jnp.exp(y - m)                                # numerically stable exp
    s = jnp.sum(e, axis=1, keepdims=True)             # (tb, 1) row sum
    inv_s = pl.reciprocal(s, approx=False)            # exact
    logits_ref[...] = (e * inv_s).astype(logits_ref.dtype)

    # picked logit via iota==label mask (no one-hot input needed)
    lbl = labels_ref[...]                             # (tb, 1) int32
    class_ids = jax.lax.broadcasted_iota(jnp.int32, y.shape, 1)
    picked = jnp.sum(jnp.where(class_ids == lbl, y, 0.0),
                     axis=1, keepdims=True)           # (tb, 1)
    nll = (m + jnp.log(s)) - picked                   # logsumexp(y) - y[label]

    # Mask rows past the true batch size: the partial last block reads garbage
    # rows; their NLL must not leak into the reduced loss.
    row_ids = (pl.program_id(0) * tb
               + jax.lax.broadcasted_iota(jnp.int32, (tb, 1), 0))
    nll = jnp.where(row_ids < b, nll, 0.0)
    partial = jnp.sum(nll, axis=0, keepdims=True)     # (1, 1) per-tile sum
    nll_ref[...] = jnp.broadcast_to(partial, nll_ref.shape)


def _softmax_kernel(y_ref, logits_ref):
    # labels=None fast path: softmax only, no loss traffic.
    y = y_ref[...].astype(jnp.float32)
    m = jnp.max(y, axis=1, keepdims=True)
    e = jnp.exp(y - m)
    s = jnp.sum(e, axis=1, keepdims=True)
    logits_ref[...] = (e * pl.reciprocal(s, approx=False)).astype(logits_ref.dtype)


# --------------------------------------------------------------------------
# pallas_call wrappers
# --------------------------------------------------------------------------
def _compiler_params(vmem_limit):
    return pltpu.CompilerParams(
        dimension_semantics=("parallel",),
        vmem_limit_bytes=vmem_limit,
    )


def _softmax_xent_call(y, labels_i32, tb, vmem_limit):
    b, c = y.shape
    nt = pl.cdiv(b, tb)
    kernel = functools.partial(_softmax_xent_kernel, b, tb)
    return pl.pallas_call(
        kernel,
        out_shape=(
            jax.ShapeDtypeStruct((b, c), y.dtype),               # logits
            jax.ShapeDtypeStruct((nt * 8, 128), jnp.float32),    # per-tile NLL sums
        ),
        grid_spec=pltpu.PrefetchScalarGridSpec(
            num_scalar_prefetch=0,
            grid=(nt,),
            in_specs=[
                pl.BlockSpec((tb, c), lambda i: (i, 0)),
                pl.BlockSpec((tb, 1), lambda i: (i, 0)),
            ],
            out_specs=(
                pl.BlockSpec((tb, c), lambda i: (i, 0)),
                pl.BlockSpec((8, 128), lambda i: (i, 0)),
            ),
        ),
        compiler_params=_compiler_params(vmem_limit),
    )(y, labels_i32)


def _softmax_call(y, tb, vmem_limit):
    b, c = y.shape
    nt = pl.cdiv(b, tb)
    return pl.pallas_call(
        _softmax_kernel,
        out_shape=jax.ShapeDtypeStruct((b, c), y.dtype),
        grid_spec=pltpu.PrefetchScalarGridSpec(
            num_scalar_prefetch=0,
            grid=(nt,),
            in_specs=[pl.BlockSpec((tb, c), lambda i: (i, 0))],
            out_specs=pl.BlockSpec((tb, c), lambda i: (i, 0)),
        ),
        compiler_params=_compiler_params(vmem_limit),
    )(y)


# --------------------------------------------------------------------------
# Module
# --------------------------------------------------------------------------
class Softmax:
    """JAX/Pallas port of the parameter-free PyTorch Softmax loss module."""

    def __init__(self, **options):
        del options
        self._vmem_limit, self._tile_budget = _vmem_budgets()

    def __call__(self, x, y, labels=None):
        return self.forward(x, y, labels)

    def forward(self, x, y, labels=None):
        del x  # unused, mirroring the PyTorch module
        b, c = y.shape
        tb = _choose_tb(b, c, jnp.dtype(y.dtype).itemsize, self._tile_budget)

        if labels is None:
            logits = _softmax_call(y, tb, self._vmem_limit)
            return logits, 0

        labels_i32 = labels.astype(jnp.int32).reshape(b, 1)
        logits, nll_parts = _softmax_xent_call(y, labels_i32, tb, self._vmem_limit)
        # One partial NLL sum per batch tile, broadcast over its (8,128) block;
        # pick element [0,0] of each block and finish the mean here.
        tile_sums = nll_parts.reshape(-1, 8 * 128)[:, 0]
        loss = jnp.sum(tile_sums) / b      # f.cross_entropy default: mean
        return logits, loss


# --------------------------------------------------------------------------
# Self-test
# --------------------------------------------------------------------------
if __name__ == "__main__":
    key = jax.random.PRNGKey(0)
    kx, ky, kl = jax.random.split(key, 3)

    B, C = 8, 32            # batch of 8 samples, 32 classes
    x = jax.random.normal(kx, (B, 64), dtype=jnp.float32)   # unused features
    y = jax.random.normal(ky, (B, C), dtype=jnp.float32)    # logits input
    labels = jax.random.randint(kl, (B,), 0, C)

    mod = Softmax()

    # labels=None path
    logits_only, zero_loss = mod(x, y, labels=None)
    jax.block_until_ready(logits_only)

    # labels path
    logits, loss = mod(x, y, labels)
    jax.block_until_ready((logits, loss))

    # sanity check against pure-JAX reference
    ref_logits = jax.nn.softmax(y, axis=1)
    ref_loss = -jnp.mean(
        jnp.take_along_axis(jax.nn.log_softmax(y, axis=1),
                            labels[:, None], axis=1))
    assert jnp.allclose(logits_only, ref_logits, atol=1e-5, rtol=1e-5)
    assert jnp.allclose(logits, ref_logits, atol=1e-5, rtol=1e-5)
    assert jnp.allclose(loss, ref_loss, atol=1e-5, rtol=1e-5)
    assert zero_loss == 0

    # second check: batch not a multiple of the tile (exercises the partial
    # last block + in-kernel masked NLL reduction + multi-step parallel grid)
    B2, C2 = 20, 128
    ky2, kl2 = jax.random.split(ky)
    y2 = jax.random.normal(ky2, (B2, C2), dtype=jnp.float32)
    labels2 = jax.random.randint(kl2, (B2,), 0, C2)
    logits2, loss2 = mod(None, y2, labels2)
    jax.block_until_ready((logits2, loss2))
    ref_logits2 = jax.nn.softmax(y2, axis=1)
    ref_loss2 = -jnp.mean(
        jnp.take_along_axis(jax.nn.log_softmax(y2, axis=1),
                            labels2[:, None], axis=1))
    assert jnp.allclose(logits2, ref_logits2, atol=1e-5, rtol=1e-5)
    assert jnp.allclose(loss2, ref_loss2, atol=1e-5, rtol=1e-5)

    print("KERNEL_OK")
</pallas_src>

<mosaic_0001>
module attributes {stable_mosaic.version = 11 : i64} {
  func.func @_softmax_kernel(%arg0: i32, %arg1: memref<8x32xf32, #tpu.memory_space<vmem>>, %arg2: memref<8x32xf32, #tpu.memory_space<vmem>>) attributes {dimension_semantics = [#tpu.dimension_semantics<parallel>], iteration_bounds = array<i64: 1>, scalar_prefetch = 0 : i64, scratch_operands = 0 : i64, tpu.core_type = #tpu.core_type<tc>, window_params = [{transform_indices = @transform_0, window_bounds = array<i64: 8, 32>}, {transform_indices = @transform_1, window_bounds = array<i64: 8, 32>}]} {
    %c0 = arith.constant 0 : index
    %c0_0 = arith.constant 0 : index
    %0 = vector.load %arg1[%c0, %c0_0] : memref<8x32xf32, #tpu.memory_space<vmem>>, vector<8x32xf32>
    %cst = arith.constant dense<0xFF800000> : vector<8xf32>
    %1 = vector.multi_reduction <maximumf>, %0, %cst [1] : vector<8x32xf32> to vector<8xf32>
    %2 = vector.shape_cast %1 : vector<8xf32> to vector<8x1xf32>
    %3 = vector.broadcast %2 : vector<8x1xf32> to vector<8x32xf32>
    %4 = arith.subf %0, %3 : vector<8x32xf32>
    %5 = math.exp %4 : vector<8x32xf32>
    %cst_1 = arith.constant dense<0.000000e+00> : vector<8xf32>
    %6 = vector.multi_reduction <add>, %5, %cst_1 [1] : vector<8x32xf32> to vector<8xf32>
    %7 = vector.shape_cast %6 : vector<8xf32> to vector<8x1xf32>
    %8 = tpu.reciprocal %7 : vector<8x1xf32> -> vector<8x1xf32>
    %9 = vector.broadcast %8 : vector<8x1xf32> to vector<8x32xf32>
    %10 = arith.mulf %5, %9 : vector<8x32xf32>
    %c0_2 = arith.constant 0 : index
    %c0_3 = arith.constant 0 : index
    %11 = vector.load %arg2[%c0_2, %c0_3] : memref<8x32xf32, #tpu.memory_space<vmem>>, vector<8x32xf32>
    tpu.vector_store %arg2[%c0_2, %c0_3], %10 {strides = array<i32>} : memref<8x32xf32, #tpu.memory_space<vmem>>, vector<8x32xf32>,
    return
  }
  func.func @transform_0(%arg0: i32) -> (i32, i32) {
    %c0_i32 = arith.constant 0 : i32
    %c0_i32_0 = arith.constant 0 : i32
    return %arg0, %c0_i32 : i32, i32
  }
  func.func @transform_1(%arg0: i32) -> (i32, i32) {
    %c0_i32 = arith.constant 0 : i32
    %c0_i32_0 = arith.constant 0 : i32
    return %arg0, %c0_i32 : i32, i32
  }
}

</mosaic_0001>

<bundles_post_ra>
// kernel: tpu_custom_call.1
= control target key start
LH: loop header
LB: loop body
LE: loop exit
PB: predicated region body
PF: predicated region fallthrough
CT: control target
= control target key end

     0   :  { %6 = vsyncpa [#allocation3], 0  ;;  %s143_s0 = inlined_call_operand.hbm [shape: f32[8,32], index: 0, kind: input, shape index: {}]   ;;  %s144_s1 = inlined_call_operand.hbm [shape: f32[8,32], index: 1, kind: output, shape index: {}]  }
   0x1   :  { %7 = vsyncpa [#allocation4], 0  ;;  %s104_s6 = smov [#allocation2]   ;;  %s56_s10 = scalar_lea.hbm %s143_s0, 128 }
   0x2   :  { %s14_s7 = sshll.u32 %s104_s6, 4  ;;  %p57_p0 = scmp.ne.s32.totalorder %s143_s0, %s56_s10  ;;  %s15_s7 = int_to_ptr.vmem [resolvable:$true] %s14_s7 }
   0x3   :  { %p60_p1 = scmp.lt.u32.totalorder %s56_s10, %s143_s0 }
   0x5   :  { %p62_p2 = pnand %p60_p1, %p57_p0 }
   0x7   :  { %65 = shalt.err (!%p62_p2)
}
   0x8   :  { %s66_s15 = scalar_lea.vmem %s15_s7, 128  ;;  %p71_p4 = scmp.lt.s32.totalorder %s15_s7, %s15_s7 }
   0x9   :  { %p67_p3 = scmp.ne.s32.totalorder %s15_s7, %s66_s15  ;;  %p72_p5 = scmp.lt.s32.totalorder %s66_s15, %s66_s15 }
   0xb   :  { %p73_p6 = por %p72_p5, %p71_p4 }
   0xd   :  { %p74_p7 = pnand %p73_p6, %p67_p3 }
   0xf   :  { %77 = shalt.err (!%p74_p7)
}
  0x10   :  { %17 = dma.hbm_to_vmem [thread:$0]  %s143_s0, 128, %s15_s7, [#allocation3]  }
  0x11   :  { %100 = dma.done.wait [#allocation3], 128  }
  0x12   :  { %101 = vsyncadd [#allocation3], 4294967168  ;;  %vm22_vm0 = vcmask 261120   ;;  %v21_v0 = vld [vmem:[#allocation2] sm:$0xff]  ;;  %s105_s18 = smov [#allocation5]  }
  0x13   :  { %v23_v1 = vsel %vm22_vm0, %v21_v0, -inf  ;;  %s41_s19 = sshll.u32 %s105_s18, 4  ;;  %s42_s19 = int_to_ptr.vmem [resolvable:$true] %s41_s19 }
  0x14   :  { %24 = vmax.xlane.f32.xlu0 %v23_v1  ;;  %s78_s0 = scalar_lea.vmem %s42_s19, 128  ;;  %p83_p9 = scmp.lt.s32.totalorder %s42_s19, %s42_s19 }
  0x15   :  { %p79_p8 = scmp.ne.s32.totalorder %s42_s19, %s78_s0  ;;  %p84_p10 = scmp.lt.s32.totalorder %s78_s0, %s78_s0 }
  0x17   :  { %p85_p11 = por %p84_p10, %p83_p9 }
  0x19   :  { %p86_p12 = pnand %p85_p11, %p79_p8 }
  0xa1   :  { %v25_v2 = vpop.xlane.xlu0 %24 }
  0xa2   :  { %v26_v3 = vsub.f32 %v21_v0, %v25_v2 }
  0xa4   :  { %v27_v4 = vmul.f32 1.442695, %v26_v3 }
  0xa6   :  { %52 = vpow2.f32 %v27_v4 }
  0xb0   :  { %v53_v5 = vpop.eup %52 }
  0xb1   :  { %v29_v6 = vsel %vm22_vm0, %v53_v5, 0.0 }
  0xb2   :  { %30 = vadd.xlane.f32.xlu0 %v29_v6 }
 0x13f   :  { %v31_v7 = vpop.xlane.xlu0 %30 }
 0x140   :  { %54 = vrcp.f32 %v31_v7 }
 0x14a   :  { %v55_v8 = vpop.eup %54 }
 0x14b   :  { %v33_v9 = vmul.f32 %v55_v8, %v53_v5 }
 0x14d   :  { %34 = vst.msk [vmem:[#allocation5] sm:$0xff] %vm22_vm0, %v33_v9 }
 0x14e   :  { %89 = shalt.err (!%p86_p12)
}
 0x14f   :  { %s90_s22 = scalar_lea.hbm %s144_s1, 128 }
 0x150   :  { %p91_p13 = scmp.ne.s32.totalorder %s144_s1, %s90_s22  ;;  %p94_p0 = scmp.lt.u32.totalorder %s90_s22, %s144_s1 }
 0x152   :  { %p96_p1 = pnand %p94_p0, %p91_p13 }
 0x154   :  { %99 = shalt.err (!%p96_p1)
}
 0x155   :  { %44 = dma.vmem_to_hbm [thread:$0]  %s42_s19, 128, %s144_s1, [#allocation4]  }
 0x156   :  { %102 = dma.done.wait [#allocation4], 128  }
 0x157   :  { %103 = vsyncadd [#allocation4], 4294967168 }
 0x158   :  { %48 = vsyncpa [#allocation3], 1 }
 0x159   :  { %49 = vsyncpa [#allocation4], 1 }

</bundles_post_ra>
